<compile_context>
chip_gen: v5e
topology: v5e:2x2
jax: 0.10.0
libtpu: 0.0.40
codegen_flags: <defaults>
</compile_context>

<pallas_src>
import jax
import jax.numpy as jnp
from jax.experimental import pallas as pl
from jax.experimental.pallas import tpu as pltpu

_EPS = 1e-5  # PyTorch default eps for both InstanceNorm2d and BatchNorm2d


# ------------------------------- kernel ------------------------------------ #

def ibn_kernel(x_ref, inw_ref, inb_ref, bns_ref, bnb_ref, out_ref):
    """x_ref / out_ref: (1, TC, HW);  param refs: (TC, 1).

    Per channel c of this tile:
      IN channel:  inw[c] = IN weight, inb[c] = IN bias, bns[c] = bnb[c] = 0
      BN channel:  inw[c] = inb[c] = 0, bns[c]/bnb[c] = folded running stats
    so  scale = inw * rsqrt(var + eps) + bns
        bias  = inb - mean * inw * rsqrt(var + eps) + bnb
    reduces exactly to the IN or the BN transform for that channel.
    """
    x = x_ref[0].astype(jnp.float32)                          # (TC, HW)
    hw = x.shape[-1]
    mean = jnp.sum(x, axis=-1, keepdims=True) * (1.0 / hw)    # (TC, 1)
    xc = x - mean
    var = jnp.sum(xc * xc, axis=-1, keepdims=True) * (1.0 / hw)
    inv = jax.lax.rsqrt(var + _EPS)                           # EUP slot
    s_in = inw_ref[...] * inv                                 # 0 for BN channels
    scale = s_in + bns_ref[...]
    bias = inb_ref[...] - mean * s_in + bnb_ref[...]
    out_ref[0] = (x * scale + bias).astype(out_ref.dtype)


# ------------------------------ wrapper ------------------------------------ #

def _channel_tile(C):
    """Largest channel tile <= 128 that evenly divides C (bounds VMEM on v7x)."""
    if C <= 128:
        return C
    for t in range(128, 0, -1):
        if C % t == 0:
            return t
    return 1


def ibn_forward(x_nchw, in_weight, in_bias, bn_gamma, bn_beta,
                bn_running_mean, bn_running_var, eps=_EPS):
    """IBN forward (eval mode). Input/output NCHW float32."""
    N, C, H, W = x_nchw.shape
    half = C // 2                      # torch.split(x, half, 1) -> [half, C-half]
    HW = H * W
    x = x_nchw.reshape(N, C, HW)       # contiguous reshape: free in XLA

    f32 = jnp.float32
    zeros_bn = jnp.zeros((C - half,), f32)
    zeros_in = jnp.zeros((half,), f32)
    bn_scale = bn_gamma.astype(f32) / jnp.sqrt(bn_running_var.astype(f32) + eps)
    bn_bias = bn_beta.astype(f32) - bn_running_mean.astype(f32) * bn_scale

    # Packed per-channel parameters of length C (see kernel docstring).
    inw = jnp.concatenate([in_weight.astype(f32), zeros_bn]).reshape(C, 1)
    inb = jnp.concatenate([in_bias.astype(f32), zeros_bn]).reshape(C, 1)
    bns = jnp.concatenate([zeros_in, bn_scale]).reshape(C, 1)
    bnb = jnp.concatenate([zeros_in, bn_bias]).reshape(C, 1)

    TC = _channel_tile(C)
    grid = (N, C // TC)

    x_spec = pl.BlockSpec((1, TC, HW), lambda n, c: (n, c, 0))
    p_spec = pl.BlockSpec((TC, 1), lambda n, c: (c, 0))

    out = pl.pallas_call(
        ibn_kernel,
        out_shape=jax.ShapeDtypeStruct((N, C, HW), x.dtype),
        grid=grid,
        in_specs=[x_spec, p_spec, p_spec, p_spec, p_spec],
        out_specs=x_spec,
        compiler_params=pltpu.CompilerParams(
            dimension_semantics=("parallel", "parallel")),
    )(x, inw, inb, bns, bnb)
    return out.reshape(N, C, H, W)


# ----------------------------- reference ------------------------------------ #

def _ref_forward(x_nchw, half, in_weight, in_bias, bn_gamma, bn_beta,
                 bn_running_mean, bn_running_var, eps=_EPS):
    x_in = x_nchw[:, :half]
    x_bn = x_nchw[:, half:]
    # InstanceNorm2d(affine=True): per-(n,c) biased stats over H,W.
    mu = jnp.mean(x_in, axis=(2, 3), keepdims=True)
    var = jnp.var(x_in, axis=(2, 3), keepdims=True)
    y_in = (x_in - mu) / jnp.sqrt(var + eps)
    y_in = y_in * in_weight.reshape(1, -1, 1, 1) + in_bias.reshape(1, -1, 1, 1)
    # BatchNorm2d (eval): running statistics.
    s = bn_gamma / jnp.sqrt(bn_running_var + eps)
    b = bn_beta - bn_running_mean * s
    y_bn = x_bn * s.reshape(1, -1, 1, 1) + b.reshape(1, -1, 1, 1)
    return jnp.concatenate([y_in, y_bn], axis=1)


# -------------------------------- main -------------------------------------- #

if __name__ == "__main__":
    key = jax.random.PRNGKey(0)
    N, C, H, W = 2, 4, 16, 16          # planes = 4 -> half = 2 (assumes even C)
    half = C // 2
    half2 = C - half

    ks = jax.random.split(key, 8)
    x = jax.random.normal(ks[0], (N, C, H, W), jnp.float32)

    in_weight = jax.random.uniform(ks[1], (half,), minval=0.5, maxval=1.5)
    in_bias = jax.random.normal(ks[2], (half,)) * 0.1
    bn_gamma = jax.random.uniform(ks[3], (half2,), minval=0.5, maxval=1.5)
    bn_beta = jax.random.normal(ks[4], (half2,)) * 0.1
    bn_running_mean = jax.random.normal(ks[5], (half2,)) * 0.1
    bn_running_var = jax.random.uniform(ks[6], (half2,), minval=0.5, maxval=1.5)

    out = jax.block_until_ready(
        ibn_forward(x, in_weight, in_bias, bn_gamma, bn_beta,
                    bn_running_mean, bn_running_var))
    ref = jax.block_until_ready(
        _ref_forward(x, half, in_weight, in_bias, bn_gamma, bn_beta,
                     bn_running_mean, bn_running_var))

    assert out.shape == (N, C, H, W), out.shape
    assert jnp.allclose(out, ref, rtol=1e-4, atol=1e-4), \
        float(jnp.max(jnp.abs(out - ref)))
    print("KERNEL_OK")
</pallas_src>

<mosaic_0001>
module attributes {stable_mosaic.version = 11 : i64} {
  func.func @ibn_kernel(%arg0: i32, %arg1: i32, %arg2: memref<1x4x256xf32, #tpu.memory_space<vmem>>, %arg3: memref<4x1xf32, #tpu.memory_space<vmem>>, %arg4: memref<4x1xf32, #tpu.memory_space<vmem>>, %arg5: memref<4x1xf32, #tpu.memory_space<vmem>>, %arg6: memref<4x1xf32, #tpu.memory_space<vmem>>, %arg7: memref<1x4x256xf32, #tpu.memory_space<vmem>>) attributes {dimension_semantics = [#tpu.dimension_semantics<parallel>, #tpu.dimension_semantics<parallel>], iteration_bounds = array<i64: 2, 1>, scalar_prefetch = 0 : i64, scratch_operands = 0 : i64, tpu.core_type = #tpu.core_type<tc>, window_params = [{transform_indices = @transform_0, window_bounds = array<i64: 1, 4, 256>}, {transform_indices = @transform_1, window_bounds = array<i64: 4, 1>}, {transform_indices = @transform_2, window_bounds = array<i64: 4, 1>}, {transform_indices = @transform_3, window_bounds = array<i64: 4, 1>}, {transform_indices = @transform_4, window_bounds = array<i64: 4, 1>}, {transform_indices = @transform_5, window_bounds = array<i64: 1, 4, 256>}]} {
    %c0 = arith.constant 0 : index
    %c0_0 = arith.constant 0 : index
    %c0_1 = arith.constant 0 : index
    %0 = vector.load %arg2[%c0, %c0_0, %c0_1] : memref<1x4x256xf32, #tpu.memory_space<vmem>>, vector<1x4x256xf32>
    %1 = vector.shape_cast %0 : vector<1x4x256xf32> to vector<4x256xf32>
    %cst = arith.constant dense<0.000000e+00> : vector<4xf32>
    %2 = vector.multi_reduction <add>, %1, %cst [1] : vector<4x256xf32> to vector<4xf32>
    %3 = vector.shape_cast %2 : vector<4xf32> to vector<4x1xf32>
    %cst_2 = arith.constant 3.906250e-03 : f32
    %4 = vector.broadcast %cst_2 : f32 to vector<4x1xf32>
    %5 = arith.mulf %3, %4 : vector<4x1xf32>
    %6 = vector.broadcast %5 : vector<4x1xf32> to vector<4x256xf32>
    %7 = arith.subf %1, %6 : vector<4x256xf32>
    %8 = arith.mulf %7, %7 : vector<4x256xf32>
    %cst_3 = arith.constant dense<0.000000e+00> : vector<4xf32>
    %9 = vector.multi_reduction <add>, %8, %cst_3 [1] : vector<4x256xf32> to vector<4xf32>
    %10 = vector.shape_cast %9 : vector<4xf32> to vector<4x1xf32>
    %cst_4 = arith.constant 3.906250e-03 : f32
    %11 = vector.broadcast %cst_4 : f32 to vector<4x1xf32>
    %12 = arith.mulf %10, %11 : vector<4x1xf32>
    %cst_5 = arith.constant 9.99999974E-6 : f32
    %13 = vector.broadcast %cst_5 : f32 to vector<4x1xf32>
    %14 = arith.addf %12, %13 : vector<4x1xf32>
    %15 = math.rsqrt %14 : vector<4x1xf32>
    %c0_6 = arith.constant 0 : index
    %c0_7 = arith.constant 0 : index
    %16 = vector.load %arg3[%c0_6, %c0_7] : memref<4x1xf32, #tpu.memory_space<vmem>>, vector<4x1xf32>
    %17 = arith.mulf %16, %15 : vector<4x1xf32>
    %c0_8 = arith.constant 0 : index
    %c0_9 = arith.constant 0 : index
    %18 = vector.load %arg5[%c0_8, %c0_9] : memref<4x1xf32, #tpu.memory_space<vmem>>, vector<4x1xf32>
    %19 = arith.addf %17, %18 : vector<4x1xf32>
    %c0_10 = arith.constant 0 : index
    %c0_11 = arith.constant 0 : index
    %20 = vector.load %arg4[%c0_10, %c0_11] : memref<4x1xf32, #tpu.memory_space<vmem>>, vector<4x1xf32>
    %21 = arith.mulf %5, %17 : vector<4x1xf32>
    %22 = arith.subf %20, %21 : vector<4x1xf32>
    %c0_12 = arith.constant 0 : index
    %c0_13 = arith.constant 0 : index
    %23 = vector.load %arg6[%c0_12, %c0_13] : memref<4x1xf32, #tpu.memory_space<vmem>>, vector<4x1xf32>
    %24 = arith.addf %22, %23 : vector<4x1xf32>
    %25 = vector.broadcast %19 : vector<4x1xf32> to vector<4x256xf32>
    %26 = arith.mulf %1, %25 : vector<4x256xf32>
    %27 = vector.broadcast %24 : vector<4x1xf32> to vector<4x256xf32>
    %28 = arith.addf %26, %27 : vector<4x256xf32>
    %c0_14 = arith.constant 0 : index
    %c0_15 = arith.constant 0 : index
    %c0_16 = arith.constant 0 : index
    %29 = vector.load %arg7[%c0_14, %c0_15, %c0_16] : memref<1x4x256xf32, #tpu.memory_space<vmem>>, vector<1x4x256xf32>
    %30 = vector.shape_cast %29 : vector<1x4x256xf32> to vector<4x256xf32>
    %31 = vector.shape_cast %28 : vector<4x256xf32> to vector<1x4x256xf32>
    tpu.vector_store %arg7[%c0_14, %c0_15, %c0_16], %31 {strides = array<i32>} : memref<1x4x256xf32, #tpu.memory_space<vmem>>, vector<1x4x256xf32>,
    return
  }
  func.func @transform_0(%arg0: i32, %arg1: i32) -> (i32, i32, i32) {
    %c0_i32 = arith.constant 0 : i32
    %c0_i32_0 = arith.constant 0 : i32
    return %arg0, %arg1, %c0_i32 : i32, i32, i32
  }
  func.func @transform_1(%arg0: i32, %arg1: i32) -> (i32, i32) {
    %c0_i32 = arith.constant 0 : i32
    %c0_i32_0 = arith.constant 0 : i32
    return %arg1, %c0_i32 : i32, i32
  }
  func.func @transform_2(%arg0: i32, %arg1: i32) -> (i32, i32) {
    %c0_i32 = arith.constant 0 : i32
    %c0_i32_0 = arith.constant 0 : i32
    return %arg1, %c0_i32 : i32, i32
  }
  func.func @transform_3(%arg0: i32, %arg1: i32) -> (i32, i32) {
    %c0_i32 = arith.constant 0 : i32
    %c0_i32_0 = arith.constant 0 : i32
    return %arg1, %c0_i32 : i32, i32
  }
  func.func @transform_4(%arg0: i32, %arg1: i32) -> (i32, i32) {
    %c0_i32 = arith.constant 0 : i32
    %c0_i32_0 = arith.constant 0 : i32
    return %arg1, %c0_i32 : i32, i32
  }
  func.func @transform_5(%arg0: i32, %arg1: i32) -> (i32, i32, i32) {
    %c0_i32 = arith.constant 0 : i32
    %c0_i32_0 = arith.constant 0 : i32
    return %arg0, %arg1, %c0_i32 : i32, i32, i32
  }
}

</mosaic_0001>

<bundles_post_ra>
// kernel: tpu_custom_call.1
= control target key start
LH: loop header
LB: loop body
LE: loop exit
PB: predicated region body
PF: predicated region fallthrough
CT: control target
= control target key end

     0   :  { %10 = vsyncpa [#allocation3], 0  ;;  %s942_s0 = inlined_call_operand.hbm [shape: f32[2,4,256], index: 0, kind: input, shape index: {}]   ;;  %s943_s1 = inlined_call_operand.vmem [shape: f32[4,1], index: 1, kind: input, shape index: {}]   ;;  %s944_s2 = inlined_call_operand.vmem [shape: f32[4,1], index: 2, kind: input, shape index: {}]   ;;  %s945_s3 = inlined_call_operand.vmem [shape: f32[4,1], index: 3, kind: input, shape index: {}]   ;;  %s946_s4 = inlined_call_operand.vmem [shape: f32[4,1], index: 4, kind: input, shape index: {}]   ;;  %s947_s5 = inlined_call_operand.hbm [shape: f32[2,4,256], index: 5, kind: output, shape index: {}]  }
   0x1   :  { %12 = vsyncpa [#allocation3 + $0x1], 0 }
   0x2   :  { %13 = vsyncpa [#allocation4], 0 }
   0x3   :  { %15 = vsyncpa [#allocation4 + $0x1], 0  ;;  %s802_s18 = smov 0   ;;  %s804_s19 = smov 0  }
   0x4   :  { %s806_s20 = smov 0   ;;  %s808_s21 = smov 0  }
   0x5   :  { %s810_s22 = smov 0   ;;  %s812_s23 = smov 0  }
   0x6 LB: > { %s567_s24 = sadd.s32 4294967295, %s768_s23   ;;  %s568_s25 = sadd.s32 4294967294, %s768_s23   ;;  %s768_s23 = sphi %s812_s23, %s21_s23   ;;  %s764_s22 = sphi %s810_s22, %s956_s22   ;;  %s760_s21 = sphi %s808_s21, %s955_s21   ;;  %s756_s20 = sphi %s806_s20, %s954_s20   ;;  %s752_s19 = sphi %s804_s19, %s953_s19   ;;  %s748_s18 = sphi %s802_s18, %s952_s18  }
   0x7   : > { %s33_s26 = sadd.s32 1, %s764_s22  ;;  %s42_s27 = sadd.s32 1, %s756_s20 }
   0x8   : > { %p35_p0 = scmp.ge.s32.totalorder %s33_s26, 2  ;;  %p49_p1 = scmp.ne.s32.totalorder %s756_s20, %s752_s19 }
   0x9   : > { %p50_p2 = scmp.eq.s32.totalorder %s768_s23, 0  ;;  %p55_p3 = scmp.ne.s32.totalorder %s752_s19, %s748_s18 }
   0xa   : > { %s958_s26 = smov (%p35_p0, %s33_s26), 0  ;;  %p56_p5 = scmp.eq.s32.totalorder %s567_s24, 0 }
   0xb   : > { %p843_p4 = por %p50_p2, %p49_p1  ;;  %s37_s29 = ssub.s32 %s764_s22, %s958_s26 }
   0xc   : > { %p185_p6 = scmp.eq.s32.totalorder %s567_s24, 1  ;;  %p40_p7 = scmp.eq.s32.totalorder %s37_s29, 0 }
   0xd   : > { %p849_p8 = por %p56_p5, %p55_p3  ;;  %p191_p10 = scmp.eq.s32.totalorder %s568_s25, 1 }
   0xe   : > { %p853_p9 = por %p185_p6, %p49_p1  ;;  %p574_p12 = scmp.ge.s32.totalorder %s768_s23, 2 }
   0xf   : > { %s858_s7 = scalar_select %p40_p7, %s756_s20, %s42_s27  }
  0x10   : > { %p860_p11 = por %p191_p10, %p55_p3  ;;  %p600_p13 = scmp.lt.s32.totalorder %s768_s23, 2 }
  0x11   : > { %s239_s9 = sand.u32 1, %s756_s20   ;;  %s586_s11 = sshll.u32 %s764_s22, 3 }
  0x12   : > { %s575_s10 = sshll.u32 %s239_s9, 3  ;;  %s250_s14 = scalar_lea.hbm %s942_s0, %s586_s11 }
  0x13   : > { %s243_s15 = scalar_lea.vmem [#allocation2], %s575_s10  ;;  %s252_s17 = sshll.u32 %s250_s14, 4  ;;  %s253_s17 = int_to_ptr.hbm [resolvable:$true] %s252_s17 }
  0x14   : > { %s254_s16 = sshll.u32 %s243_s15, 4  ;;  %p593_p0 = pnand %p600_p13, %p843_p4  ;;  %s255_s16 = int_to_ptr.vmem [resolvable:$true] %s254_s16 }
  0x15   : > { %p578_p1 = scmp.ge.s32.totalorder %s768_s23, 1  ;;  %p259_p2 = scmp.lt.s32.totalorder %s768_s23, 3 }
  0x16   : > { %s240_s24 = scalar_lea.sflag [#allocation3], %s239_s9 }
  0x17   : > { %595 = dma.hbm_to_vmem [thread:$0]  (!%p593_p0), %s253_s17, 128, %s255_s16, %s240_s24  }
  0x18   : > { %p260_p3 = pnand %p578_p1, %p259_p2 }
  0x19   : > { %s876_s25 = sand.u32 (!%p260_p3), 1, %s752_s19  }
  0x1a   : > { %263 = sbr.rel (%p260_p3) target bundleno = 451 (0x1c3), region = 40  ;;  %s579_s27 = sshll.u32 (!%p260_p3), %s876_s25, 3 }
  0x1b   : > { %s266_s29 = scalar_lea.sflag (!%p260_p3), [#allocation3], %s876_s25  ;;  %s269_s10 = scalar_lea.vmem (!%p260_p3), [#allocation2], %s579_s27 }
  0x1f   : > { %739 = dma.done.wait (%p849_p8), %s266_s29, 128  }
  0x20   : > { %741 = vsyncadd (%p849_p8), %s266_s29, 4294967168  ;;  %v329_v0 = vld [vmem:[%s269_s10] sm:$0xff]  ;;  %vm336_vm0 = vcmask 1043456   ;;  %v770_v6 = vmov 839922192   ;;  %v771_v19 = vmov 0  }
  0x21   : > { %331 = vst [vmem:[#allocation1] ss:$2 sm:$0xff] %v329_v0  ;;  %v345_v7 = vunpack.c.l.s4 %v770_v6  ;;  %652 = vset.pattern.permute.xlu1 %v771_v19  ;;  %653 = vset.pattern.permute.xlu0 %v771_v19  ;;  %v374_v29 = vld [vmem:[%s943_s1] sm:$0xf]  ;;  %s587_s16 = sshll.u32 %s760_s21, 3  ;;  %s312_s10 = scalar_lea.vmem [#allocation5], %s579_s27 }
  0x22   : > { %v376_v31 = vld [vmem:[%s945_s3] sm:$0xf]  ;;  %s418_s29 = scalar_lea.hbm %s947_s5, %s587_s16  ;;  %s420_s28 = sshll.u32 %s312_s10, 4  ;;  %s421_s28 = int_to_ptr.vmem [resolvable:$true] %s420_s28 }
  0x23   : > { %v346_v8 = vunpack.c.0.s8 %v345_v7  ;;  %v378_v35 = vld [vmem:[%s944_s2] sm:$0xf]  ;;  %s422_s30 = sshll.u32 %s418_s29, 4  ;;  %s405_s9 = scalar_lea.sflag [#allocation4], %s876_s25  ;;  %s423_s30 = int_to_ptr.hbm [resolvable:$true] %s422_s30 }
  0x24   : > { %v381_v37 = vld [vmem:[%s946_s4] sm:$0xf]  ;;  %s700_s11 = sshra.s32 %s423_s30, 4  ;;  %s706_s27 = scalar_lea.hbm %s947_s5, 16  ;;  %s701_s11 = int_to_ptr.hbm [resolvable:$true] %s700_s11 }
  0x25   : > { %s702_s21 = scalar_lea.hbm %s701_s11, 8  ;;  %p707_p7 = scmp.lt.s32.totalorder %s701_s11, %s947_s5 }
  0x26   : > { %p703_p4 = scmp.ne.s32.totalorder %s701_s11, %s702_s21  ;;  %p708_p8 = scmp.lt.s32.totalorder %s706_s27, %s702_s21 }
  0x28   : > { %v332_v1 = vld.sshfl [vmem:[#allocation1] sm:$0xff pattern:$0x75316420]  ;;  %v333_v2 = vld.sshfl [vmem:[#allocation1 + $0x8] sm:$0xff pattern:$0x75316420]  ;;  %p704_p5 = pnand %p703_p4, %p853_p9  ;;  %p709_p10 = por %p708_p8, %p707_p7 }
  0x29   : > { %v337_v3 = vsel %vm336_vm0, %v332_v1, 0.0  ;;  %v338_v4 = vsel %vm336_vm0, %v333_v2, 0.0 }
  0x2a   : > { %v339_v5 = vadd.f32 %v338_v4, %v337_v3  ;;  %p705_p6 = pneg %p704_p5 }
  0x2c   : > { %340 = vadd.xlane.f32.xlu0 %v339_v5  ;;  %p710_p13 = pnand %p709_p10, %p705_p6 }
  0x9f   : > { %v341_v9 = vpop.xlane.xlu0 %340 }
  0xa0   : > { %v342_v10 = vmul.f32 0.00390625, %v341_v9 }
  0xa2   : > { %v347_v11 = vperm.slane %v342_v10, %v346_v8 }
  0xa4   : > { %v349_v12 = vsub.f32 %v329_v0, %v347_v11 }
  0xa6   : > { %v350_v13 = vmul.f32 %v349_v12, %v349_v12 }
  0xa8   : > { %352 = vst [vmem:[#allocation1] ss:$2 sm:$0xff] %v350_v13 }
  0xaf   : > { %v353_v14 = vld.sshfl [vmem:[#allocation1] sm:$0xff pattern:$0x75316420]  ;;  %v354_v15 = vld.sshfl [vmem:[#allocation1 + $0x8] sm:$0xff pattern:$0x75316420] }
  0xb0   : > { %v357_v16 = vsel %vm336_vm0, %v353_v14, 0.0  ;;  %v358_v17 = vsel %vm336_vm0, %v354_v15, 0.0 }
  0xb1   : > { %v359_v18 = vadd.f32 %v358_v17, %v357_v16 }
  0xb3   : > { %360 = vadd.xlane.f32.xlu0 %v359_v18 }
 0x126   : > { %v361_v20 = vpop.xlane.xlu0 %360 }
 0x127   : > { %v362_v21 = vmul.f32 0.00390625, %v361_v20 }
 0x129   : > { %v363_v22 = vadd.f32 1e-05, %v362_v21 }
 0x12b   : > { %654 = vrsqrt.f32 %v363_v22  ;;  %vm370_vm2 = vweird.f32 %v363_v22 }
 0x131   : > { %v655_v23 = vpop.eup %654 }
 0x132   : > { %v365_v24 = vmul.f32 %v655_v23, %v363_v22  ;;  %vm371_vm1 = vweird.f32 %v655_v23 }
 0x133   : > { %vm372_vm3 = vmor %vm370_vm2, %vm371_vm1 }
 0x134   : > { %v366_v25 = vmul.f32 %v655_v23, %v365_v24 }
 0x136   : > { %v367_v26 = vmul.f32 0.5, %v366_v25 }
 0x138   : > { %v368_v27 = vsub.f32 1.5, %v367_v26 }
 0x13a   : > { %v369_v28 = vmul.f32 %v655_v23, %v368_v27 }
 0x13c   : > { %v373_v30 = vsel %vm372_vm3, %v655_v23, %v369_v28 }
 0x13d   : > { %v375_v32 = vmul.f32 %v374_v29, %v373_v30 }
 0x13f   : > { %v377_v33 = vadd.f32 %v376_v31, %v375_v32  ;;  %v379_v34 = vmul.f32 %v375_v32, %v342_v10 }
 0x141   : > { %385 = vperm.xlu1 %652, %v377_v33   ;;  %v380_v36 = vsub.f32 %v378_v35, %v379_v34 }
 0x143   : > { %v382_v38 = vadd.f32 %v381_v37, %v380_v36 }
 0x149   : > { %395 = vperm.xlu1 %652, %v382_v38  }
 0x1b3   : > { %v386_v39 = vpop.permute.xlu1 %385 }
 0x1b4   : > { %v390_v40 = vperm.slane %v386_v39, %v346_v8 }
 0x1b6   : > { %v392_v42 = vmul.f32 %v390_v40, %v329_v0 }
 0x1bb   : > { %v396_v41 = vpop.permute.xlu1 %395 }
 0x1bc   : > { %v400_v43 = vperm.slane %v396_v41, %v346_v8 }
 0x1be   : > { %v402_v44 = vadd.f32 %v400_v43, %v392_v42 }
 0x1c0   : > { %403 = vst [vmem:[%s312_s10] sm:$0xff] %v402_v44 }
 0x1c1   : > { %713 = shalt.err (!%p710_p13)
}
 0x1c2   : > { %590 = dma.vmem_to_hbm [thread:$0]  (%p853_p9), %s421_s28, 128, %s423_s30, %s405_s9  }
 0x1c3 PF: > { %s434_s25 = sand.u32 1, %s748_s18   ;;  %p597_p0 = pnand %p574_p12, %p860_p11 }
 0x1c4   : > { %s435_s16 = scalar_lea.sflag [#allocation4], %s434_s25 }
 0x1c5   : > { %p598_p1 = pneg %p597_p0 }
 0x1c7   : > { %743 = dma.done.wait (%p598_p1), %s435_s16, 128  }
 0x1c8   : > { %745 = vsyncadd (%p598_p1), %s435_s16, 4294967168  ;;  %s21_s23 = sadd.s32 1, %s768_s23   ;;  %s952_s18 = smov %s752_s19 }
 0x1c9   : > { %p18_p2 = scmp.ge.s32.totalorder %s21_s23, 4   ;;  %s953_s19 = smov %s756_s20 }
 0x1ca   : > { %s954_s20 = smov %s858_s7  ;;  %s955_s21 = smov %s764_s22 }
 0x1cb   : > { %s956_s22 = smov %s958_s26  ;;  %20 = sbr.rel (!%p18_p2) target bundleno = 6 (0x6), region = 97 }
 0x1d0   :  { %441 = vsyncpa [#allocation3], 1 }
 0x1d1   :  { %443 = vsyncpa [#allocation3 + $0x1], 1 }
 0x1d2   :  { %444 = vsyncpa [#allocation4], 1 }
 0x1d3   :  { %446 = vsyncpa [#allocation4 + $0x1], 1 }

</bundles_post_ra>
